<compile_context>
chip_gen: v7x
topology: tpu7x:2x2x1
jax: 0.10.0
libtpu: 0.0.40
codegen_flags: <defaults>
</compile_context>

<pallas_src>
import numpy as np
import jax
import jax.numpy as jnp
from jax.experimental import pallas as pl
from jax.experimental.pallas import tpu as pltpu


def _softplus(x):
    # matches torch.nn.Softplus(beta=1, threshold=20)
    return jnp.where(x > 20.0, x, jnp.log1p(jnp.exp(jnp.minimum(x, 20.0))))


def lstm_last_step_kernel(x_ref, hc_ref, w_ref, out_ref):
    """Whole LSTM recurrence + Linear + Softplus.

    x_ref:  (T, B, 1)      time-major input
    hc_ref: (2, B, H)      [h0; c0]
    w_ref:  (H + pad, 4H)  packed params:
              rows 0..H-1 : W_hh^T  (i/f/o columns pre-scaled by 0.5)
              row  H      : W_ih^T  (same pre-scale)
              row  H+1    : b_ih + b_hh (same pre-scale)
              row  H+2    : hidden2sigma.weight, zero-padded to 4H lanes
              row  H+3    : [hidden2sigma.bias, 0, ...]
    out_ref: (B, 1)
    """
    T = x_ref.shape[0]
    H = w_ref.shape[1] // 4

    # Loop-invariant weights: load once, cast W_hh^T to bf16 so every per-step
    # matmul is a single MXU pass (f32 accumulation keeps the state accurate).
    whh = w_ref[0:H, :].astype(jnp.bfloat16)          # (H, 4H)
    wih = w_ref[H:H + 1, :]                           # (1, 4H)
    b = w_ref[H + 1:H + 2, :]                         # (1, 4H)

    # Hoist every timestep's input contribution out of the serial loop:
    # one vectorized broadcast-multiply over (T, B, 4H) (8 vregs at T=8).
    xw = x_ref[...] * wih + b                         # (T, B, 4H)

    h = hc_ref[0]                                     # (B, H) vreg-resident carries
    c = hc_ref[1]

    # Static unroll (T small & fixed): no VMEM round-trips for the state, and
    # the scheduler can overlap across iterations.
    for t in range(T):
        gates = xw[t] + jnp.dot(h.astype(jnp.bfloat16), whh,
                                preferred_element_type=jnp.float32)   # (B, 4H)
        # Single whole-vreg tanh.  Because i/f/o pre-activations were scaled
        # by 0.5, sigmoid(z) = 0.5*(tanh(z/2)+1) falls out of the same tanh;
        # the affine is applied once on the full vreg before slicing.
        tg = jnp.tanh(gates)
        sg = 0.5 * tg + 0.5
        i = sg[:, 0:H]
        f = sg[:, H:2 * H]
        g = tg[:, 2 * H:3 * H]
        o = sg[:, 3 * H:4 * H]
        c = f * c + i * g
        h = o * jnp.tanh(c)

    # Final projection (H -> 1): VPU multiply + lane reduction instead of an
    # N=1 MXU matmul (avoids systolic push/pop latency for one column).
    wfc = w_ref[H + 2:H + 3, 0:H]                     # (1, H)
    bfc = w_ref[H + 3:H + 4, 0:1]                     # (1, 1)
    logits = jnp.sum(h * wfc, axis=-1, keepdims=True) + bfc
    out_ref[...] = _softplus(logits)


def prepare_params(params):
    """One-time preprocessing (run ONCE, outside the per-call path).

    Gate order follows PyTorch: [i, f, g, o].  i/f/o columns and bias entries
    are pre-scaled by 0.5 so the kernel can use a single whole-vreg tanh.
    Everything is packed into one lane-dense (H+pad, 4H) f32 array so the
    kernel needs a single parameter DMA.
    """
    H = params["w_hh"].shape[1]
    gate_scale = jnp.concatenate([
        jnp.full((H,), 0.5, jnp.float32),
        jnp.full((H,), 0.5, jnp.float32),
        jnp.ones((H,), jnp.float32),
        jnp.full((H,), 0.5, jnp.float32)])

    whh_t = params["w_hh"].T * gate_scale                              # (H, 4H)
    wih_row = params["w_ih"].T * gate_scale                            # (1, 4H)
    b = ((params["b_ih"] + params["b_hh"]) * gate_scale)[None, :]      # (1, 4H)
    wfc = jnp.zeros((1, 4 * H), jnp.float32).at[0, :H].set(params["fc_w"][0])
    bfc = jnp.zeros((1, 4 * H), jnp.float32).at[0, 0].set(params["fc_b"][0])

    rows = H + 4
    pad_rows = (-rows) % 8                                             # sublane multiple
    w_all = jnp.concatenate(
        [whh_t, wih_row, b, wfc, bfc,
         jnp.zeros((pad_rows, 4 * H), jnp.float32)], axis=0)           # (H+pad, 4H)
    return w_all


@jax.jit
def recurrent_model3_forward(x, hidden, w_all):
    """x: (B, T) float32, hidden = (h0, c0) each (1, B, H), w_all from
    prepare_params.  Returns (B, 1)."""
    h0, c0 = hidden
    B, T = x.shape
    Bp = ((B + 7) // 8) * 8                            # pad batch to sublane multiple

    x_tb1 = jnp.transpose(x)[:, :, None].astype(jnp.float32)      # (T, B, 1)
    hc = jnp.stack([h0[0], c0[0]]).astype(jnp.float32)             # (2, B, H)
    if Bp != B:
        x_tb1 = jnp.pad(x_tb1, ((0, 0), (0, Bp - B), (0, 0)))
        hc = jnp.pad(hc, ((0, 0), (0, 0), (0, 0)) if False else
                     ((0, 0), (0, Bp - B), (0, 0)))

    vmem = pl.BlockSpec(memory_space=pltpu.MemorySpace.VMEM)
    out = pl.pallas_call(
        lstm_last_step_kernel,
        out_shape=jax.ShapeDtypeStruct((Bp, 1), jnp.float32),
        in_specs=[vmem, vmem, vmem],
        out_specs=vmem,
    )(x_tb1, hc, w_all)
    return out[:B]


def reference_forward(x, hidden, params):
    """Pure-JAX f32 reference mirroring the PyTorch forward (for verification)."""
    h, c = hidden[0][0], hidden[1][0]
    wih, whh = params["w_ih"], params["w_hh"]
    b = params["b_ih"] + params["b_hh"]
    H = whh.shape[1]

    def step(carry, x_t):
        h, c = carry
        gates = x_t[:, None] @ wih.T + h @ whh.T + b
        i = jax.nn.sigmoid(gates[:, 0:H])
        f = jax.nn.sigmoid(gates[:, H:2 * H])
        g = jnp.tanh(gates[:, 2 * H:3 * H])
        o = jax.nn.sigmoid(gates[:, 3 * H:4 * H])
        c = f * c + i * g
        h = o * jnp.tanh(c)
        return (h, c), None

    (h, c), _ = jax.lax.scan(step, (h, c), jnp.transpose(x))
    logits = h @ params["fc_w"].T + params["fc_b"]
    return _softplus(logits)


def init_params(key, hidden_size):
    """Deterministic init, same shapes as nn.LSTM(1, H) + nn.Linear(H, 1)."""
    H = hidden_size
    k = 1.0 / np.sqrt(H)
    keys = jax.random.split(key, 6)
    u = lambda kk, shape: jax.random.uniform(kk, shape, jnp.float32, -k, k)
    return {
        "w_ih": u(keys[0], (4 * H, 1)),    # LSTM weight_ih_l0
        "w_hh": u(keys[1], (4 * H, H)),    # LSTM weight_hh_l0
        "b_ih": u(keys[2], (4 * H,)),      # LSTM bias_ih_l0
        "b_hh": u(keys[3], (4 * H,)),      # LSTM bias_hh_l0
        "fc_w": u(keys[4], (1, H)),        # hidden2sigma.weight
        "fc_b": u(keys[5], (1,)),          # hidden2sigma.bias
    }


if __name__ == "__main__":
    B, T, H = 2, 8, 32
    key = jax.random.PRNGKey(0)
    k_param, k_x = jax.random.split(key)

    params = init_params(k_param, H)
    x = jax.random.normal(k_x, (B, T), jnp.float32)          # model input (B, T)
    hidden = (jnp.zeros((1, B, H), jnp.float32),              # init_hidden
              jnp.zeros((1, B, H), jnp.float32))

    # One-time parameter preprocessing (off the per-call path).
    w_all = jax.block_until_ready(prepare_params(params))

    out = recurrent_model3_forward(x, hidden, w_all)
    out = jax.block_until_ready(out)

    ref = jax.block_until_ready(reference_forward(x, hidden, params))
    assert out.shape == (B, 1)
    # Tolerance relaxed vs. the f32 reference because the recurrence matmul
    # runs in bf16 (f32 accumulate); observed error is O(1e-3).
    np.testing.assert_allclose(np.asarray(out), np.asarray(ref),
                               rtol=2e-2, atol=2e-2)
    print("KERNEL_OK")
</pallas_src>

<mosaic_0001>
module attributes {stable_mosaic.version = 11 : i64} {
  func.func @lstm_last_step_kernel(%arg0: memref<8x8x1xf32, #tpu.memory_space<vmem>>, %arg1: memref<2x8x32xf32, #tpu.memory_space<vmem>>, %arg2: memref<40x128xf32, #tpu.memory_space<vmem>>, %arg3: memref<8x1xf32, #tpu.memory_space<vmem>>) attributes {dimension_semantics = [], scalar_prefetch = 0 : i64, scratch_operands = 0 : i64, tpu.core_type = #tpu.core_type<tc>} {
    %c0 = arith.constant 0 : index
    %c0_0 = arith.constant 0 : index
    %0 = vector.load %arg2[%c0, %c0_0] : memref<40x128xf32, #tpu.memory_space<vmem>>, vector<32x128xf32>
    %1 = arith.truncf %0 : vector<32x128xf32> to vector<32x128xbf16>
    %c32 = arith.constant 32 : index
    %c0_1 = arith.constant 0 : index
    %2 = vector.load %arg2[%c32, %c0_1] : memref<40x128xf32, #tpu.memory_space<vmem>>, vector<1x128xf32>
    %c33 = arith.constant 33 : index
    %c0_2 = arith.constant 0 : index
    %3 = vector.load %arg2[%c33, %c0_2] : memref<40x128xf32, #tpu.memory_space<vmem>>, vector<1x128xf32>
    %c0_3 = arith.constant 0 : index
    %c0_4 = arith.constant 0 : index
    %c0_5 = arith.constant 0 : index
    %4 = vector.load %arg0[%c0_3, %c0_4, %c0_5] : memref<8x8x1xf32, #tpu.memory_space<vmem>>, vector<8x8x1xf32>
    %5 = vector.shape_cast %2 : vector<1x128xf32> to vector<1x1x128xf32>
    %6 = vector.broadcast %4 : vector<8x8x1xf32> to vector<8x8x128xf32>
    %7 = vector.broadcast %5 : vector<1x1x128xf32> to vector<8x8x128xf32>
    %8 = arith.mulf %6, %7 : vector<8x8x128xf32>
    %9 = vector.shape_cast %3 : vector<1x128xf32> to vector<1x1x128xf32>
    %10 = vector.broadcast %9 : vector<1x1x128xf32> to vector<8x8x128xf32>
    %11 = arith.addf %8, %10 : vector<8x8x128xf32>
    %c0_6 = arith.constant 0 : index
    %c0_7 = arith.constant 0 : index
    %c0_8 = arith.constant 0 : index
    %12 = vector.load %arg1[%c0_6, %c0_7, %c0_8] : memref<2x8x32xf32, #tpu.memory_space<vmem>>, vector<1x8x32xf32>
    %13 = vector.shape_cast %12 : vector<1x8x32xf32> to vector<8x32xf32>
    %c1 = arith.constant 1 : index
    %c0_9 = arith.constant 0 : index
    %c0_10 = arith.constant 0 : index
    %14 = vector.load %arg1[%c1, %c0_9, %c0_10] : memref<2x8x32xf32, #tpu.memory_space<vmem>>, vector<1x8x32xf32>
    %15 = vector.shape_cast %14 : vector<1x8x32xf32> to vector<8x32xf32>
    %16 = vector.extract_strided_slice %11 {offsets = [0, 0, 0], sizes = [1, 8, 128], strides = [1, 1, 1]} : vector<8x8x128xf32> to vector<1x8x128xf32>
    %17 = vector.shape_cast %16 : vector<1x8x128xf32> to vector<8x128xf32>
    %18 = arith.truncf %13 : vector<8x32xf32> to vector<8x32xbf16>
    %cst = arith.constant dense<0.000000e+00> : vector<8x128xf32>
    %19 = tpu.matmul %18, %1, %cst {dimension_numbers = #tpu.dot_dimension_numbers<[1], [0], [0], [1], [0, 0, 1, 1], [], []>} : vector<8x32xbf16>, vector<32x128xbf16>, vector<8x128xf32> -> vector<8x128xf32>
    %20 = arith.addf %17, %19 : vector<8x128xf32>
    %21 = math.tanh %20 : vector<8x128xf32>
    %cst_11 = arith.constant 5.000000e-01 : f32
    %22 = vector.broadcast %cst_11 : f32 to vector<8x128xf32>
    %23 = arith.mulf %22, %21 : vector<8x128xf32>
    %cst_12 = arith.constant 5.000000e-01 : f32
    %24 = vector.broadcast %cst_12 : f32 to vector<8x128xf32>
    %25 = arith.addf %23, %24 : vector<8x128xf32>
    %26 = vector.extract_strided_slice %25 {offsets = [0, 0], sizes = [8, 32], strides = [1, 1]} : vector<8x128xf32> to vector<8x32xf32>
    %27 = vector.extract_strided_slice %25 {offsets = [0, 32], sizes = [8, 32], strides = [1, 1]} : vector<8x128xf32> to vector<8x32xf32>
    %28 = vector.extract_strided_slice %21 {offsets = [0, 64], sizes = [8, 32], strides = [1, 1]} : vector<8x128xf32> to vector<8x32xf32>
    %29 = vector.extract_strided_slice %25 {offsets = [0, 96], sizes = [8, 32], strides = [1, 1]} : vector<8x128xf32> to vector<8x32xf32>
    %30 = arith.mulf %27, %15 : vector<8x32xf32>
    %31 = arith.mulf %26, %28 : vector<8x32xf32>
    %32 = arith.addf %30, %31 : vector<8x32xf32>
    %33 = math.tanh %32 : vector<8x32xf32>
    %34 = arith.mulf %29, %33 : vector<8x32xf32>
    %35 = vector.extract_strided_slice %11 {offsets = [1, 0, 0], sizes = [1, 8, 128], strides = [1, 1, 1]} : vector<8x8x128xf32> to vector<1x8x128xf32>
    %36 = vector.shape_cast %35 : vector<1x8x128xf32> to vector<8x128xf32>
    %37 = arith.truncf %34 : vector<8x32xf32> to vector<8x32xbf16>
    %cst_13 = arith.constant dense<0.000000e+00> : vector<8x128xf32>
    %38 = tpu.matmul %37, %1, %cst_13 {dimension_numbers = #tpu.dot_dimension_numbers<[1], [0], [0], [1], [0, 0, 1, 1], [], []>} : vector<8x32xbf16>, vector<32x128xbf16>, vector<8x128xf32> -> vector<8x128xf32>
    %39 = arith.addf %36, %38 : vector<8x128xf32>
    %40 = math.tanh %39 : vector<8x128xf32>
    %cst_14 = arith.constant 5.000000e-01 : f32
    %41 = vector.broadcast %cst_14 : f32 to vector<8x128xf32>
    %42 = arith.mulf %41, %40 : vector<8x128xf32>
    %cst_15 = arith.constant 5.000000e-01 : f32
    %43 = vector.broadcast %cst_15 : f32 to vector<8x128xf32>
    %44 = arith.addf %42, %43 : vector<8x128xf32>
    %45 = vector.extract_strided_slice %44 {offsets = [0, 0], sizes = [8, 32], strides = [1, 1]} : vector<8x128xf32> to vector<8x32xf32>
    %46 = vector.extract_strided_slice %44 {offsets = [0, 32], sizes = [8, 32], strides = [1, 1]} : vector<8x128xf32> to vector<8x32xf32>
    %47 = vector.extract_strided_slice %40 {offsets = [0, 64], sizes = [8, 32], strides = [1, 1]} : vector<8x128xf32> to vector<8x32xf32>
    %48 = vector.extract_strided_slice %44 {offsets = [0, 96], sizes = [8, 32], strides = [1, 1]} : vector<8x128xf32> to vector<8x32xf32>
    %49 = arith.mulf %46, %32 : vector<8x32xf32>
    %50 = arith.mulf %45, %47 : vector<8x32xf32>
    %51 = arith.addf %49, %50 : vector<8x32xf32>
    %52 = math.tanh %51 : vector<8x32xf32>
    %53 = arith.mulf %48, %52 : vector<8x32xf32>
    %54 = vector.extract_strided_slice %11 {offsets = [2, 0, 0], sizes = [1, 8, 128], strides = [1, 1, 1]} : vector<8x8x128xf32> to vector<1x8x128xf32>
    %55 = vector.shape_cast %54 : vector<1x8x128xf32> to vector<8x128xf32>
    %56 = arith.truncf %53 : vector<8x32xf32> to vector<8x32xbf16>
    %cst_16 = arith.constant dense<0.000000e+00> : vector<8x128xf32>
    %57 = tpu.matmul %56, %1, %cst_16 {dimension_numbers = #tpu.dot_dimension_numbers<[1], [0], [0], [1], [0, 0, 1, 1], [], []>} : vector<8x32xbf16>, vector<32x128xbf16>, vector<8x128xf32> -> vector<8x128xf32>
    %58 = arith.addf %55, %57 : vector<8x128xf32>
    %59 = math.tanh %58 : vector<8x128xf32>
    %cst_17 = arith.constant 5.000000e-01 : f32
    %60 = vector.broadcast %cst_17 : f32 to vector<8x128xf32>
    %61 = arith.mulf %60, %59 : vector<8x128xf32>
    %cst_18 = arith.constant 5.000000e-01 : f32
    %62 = vector.broadcast %cst_18 : f32 to vector<8x128xf32>
    %63 = arith.addf %61, %62 : vector<8x128xf32>
    %64 = vector.extract_strided_slice %63 {offsets = [0, 0], sizes = [8, 32], strides = [1, 1]} : vector<8x128xf32> to vector<8x32xf32>
    %65 = vector.extract_strided_slice %63 {offsets = [0, 32], sizes = [8, 32], strides = [1, 1]} : vector<8x128xf32> to vector<8x32xf32>
    %66 = vector.extract_strided_slice %59 {offsets = [0, 64], sizes = [8, 32], strides = [1, 1]} : vector<8x128xf32> to vector<8x32xf32>
    %67 = vector.extract_strided_slice %63 {offsets = [0, 96], sizes = [8, 32], strides = [1, 1]} : vector<8x128xf32> to vector<8x32xf32>
    %68 = arith.mulf %65, %51 : vector<8x32xf32>
    %69 = arith.mulf %64, %66 : vector<8x32xf32>
    %70 = arith.addf %68, %69 : vector<8x32xf32>
    %71 = math.tanh %70 : vector<8x32xf32>
    %72 = arith.mulf %67, %71 : vector<8x32xf32>
    %73 = vector.extract_strided_slice %11 {offsets = [3, 0, 0], sizes = [1, 8, 128], strides = [1, 1, 1]} : vector<8x8x128xf32> to vector<1x8x128xf32>
    %74 = vector.shape_cast %73 : vector<1x8x128xf32> to vector<8x128xf32>
    %75 = arith.truncf %72 : vector<8x32xf32> to vector<8x32xbf16>
    %cst_19 = arith.constant dense<0.000000e+00> : vector<8x128xf32>
    %76 = tpu.matmul %75, %1, %cst_19 {dimension_numbers = #tpu.dot_dimension_numbers<[1], [0], [0], [1], [0, 0, 1, 1], [], []>} : vector<8x32xbf16>, vector<32x128xbf16>, vector<8x128xf32> -> vector<8x128xf32>
    %77 = arith.addf %74, %76 : vector<8x128xf32>
    %78 = math.tanh %77 : vector<8x128xf32>
    %cst_20 = arith.constant 5.000000e-01 : f32
    %79 = vector.broadcast %cst_20 : f32 to vector<8x128xf32>
    %80 = arith.mulf %79, %78 : vector<8x128xf32>
    %cst_21 = arith.constant 5.000000e-01 : f32
    %81 = vector.broadcast %cst_21 : f32 to vector<8x128xf32>
    %82 = arith.addf %80, %81 : vector<8x128xf32>
    %83 = vector.extract_strided_slice %82 {offsets = [0, 0], sizes = [8, 32], strides = [1, 1]} : vector<8x128xf32> to vector<8x32xf32>
    %84 = vector.extract_strided_slice %82 {offsets = [0, 32], sizes = [8, 32], strides = [1, 1]} : vector<8x128xf32> to vector<8x32xf32>
    %85 = vector.extract_strided_slice %78 {offsets = [0, 64], sizes = [8, 32], strides = [1, 1]} : vector<8x128xf32> to vector<8x32xf32>
    %86 = vector.extract_strided_slice %82 {offsets = [0, 96], sizes = [8, 32], strides = [1, 1]} : vector<8x128xf32> to vector<8x32xf32>
    %87 = arith.mulf %84, %70 : vector<8x32xf32>
    %88 = arith.mulf %83, %85 : vector<8x32xf32>
    %89 = arith.addf %87, %88 : vector<8x32xf32>
    %90 = math.tanh %89 : vector<8x32xf32>
    %91 = arith.mulf %86, %90 : vector<8x32xf32>
    %92 = vector.extract_strided_slice %11 {offsets = [4, 0, 0], sizes = [1, 8, 128], strides = [1, 1, 1]} : vector<8x8x128xf32> to vector<1x8x128xf32>
    %93 = vector.shape_cast %92 : vector<1x8x128xf32> to vector<8x128xf32>
    %94 = arith.truncf %91 : vector<8x32xf32> to vector<8x32xbf16>
    %cst_22 = arith.constant dense<0.000000e+00> : vector<8x128xf32>
    %95 = tpu.matmul %94, %1, %cst_22 {dimension_numbers = #tpu.dot_dimension_numbers<[1], [0], [0], [1], [0, 0, 1, 1], [], []>} : vector<8x32xbf16>, vector<32x128xbf16>, vector<8x128xf32> -> vector<8x128xf32>
    %96 = arith.addf %93, %95 : vector<8x128xf32>
    %97 = math.tanh %96 : vector<8x128xf32>
    %cst_23 = arith.constant 5.000000e-01 : f32
    %98 = vector.broadcast %cst_23 : f32 to vector<8x128xf32>
    %99 = arith.mulf %98, %97 : vector<8x128xf32>
    %cst_24 = arith.constant 5.000000e-01 : f32
    %100 = vector.broadcast %cst_24 : f32 to vector<8x128xf32>
    %101 = arith.addf %99, %100 : vector<8x128xf32>
    %102 = vector.extract_strided_slice %101 {offsets = [0, 0], sizes = [8, 32], strides = [1, 1]} : vector<8x128xf32> to vector<8x32xf32>
    %103 = vector.extract_strided_slice %101 {offsets = [0, 32], sizes = [8, 32], strides = [1, 1]} : vector<8x128xf32> to vector<8x32xf32>
    %104 = vector.extract_strided_slice %97 {offsets = [0, 64], sizes = [8, 32], strides = [1, 1]} : vector<8x128xf32> to vector<8x32xf32>
    %105 = vector.extract_strided_slice %101 {offsets = [0, 96], sizes = [8, 32], strides = [1, 1]} : vector<8x128xf32> to vector<8x32xf32>
    %106 = arith.mulf %103, %89 : vector<8x32xf32>
    %107 = arith.mulf %102, %104 : vector<8x32xf32>
    %108 = arith.addf %106, %107 : vector<8x32xf32>
    %109 = math.tanh %108 : vector<8x32xf32>
    %110 = arith.mulf %105, %109 : vector<8x32xf32>
    %111 = vector.extract_strided_slice %11 {offsets = [5, 0, 0], sizes = [1, 8, 128], strides = [1, 1, 1]} : vector<8x8x128xf32> to vector<1x8x128xf32>
    %112 = vector.shape_cast %111 : vector<1x8x128xf32> to vector<8x128xf32>
    %113 = arith.truncf %110 : vector<8x32xf32> to vector<8x32xbf16>
    %cst_25 = arith.constant dense<0.000000e+00> : vector<8x128xf32>
    %114 = tpu.matmul %113, %1, %cst_25 {dimension_numbers = #tpu.dot_dimension_numbers<[1], [0], [0], [1], [0, 0, 1, 1], [], []>} : vector<8x32xbf16>, vector<32x128xbf16>, vector<8x128xf32> -> vector<8x128xf32>
    %115 = arith.addf %112, %114 : vector<8x128xf32>
    %116 = math.tanh %115 : vector<8x128xf32>
    %cst_26 = arith.constant 5.000000e-01 : f32
    %117 = vector.broadcast %cst_26 : f32 to vector<8x128xf32>
    %118 = arith.mulf %117, %116 : vector<8x128xf32>
    %cst_27 = arith.constant 5.000000e-01 : f32
    %119 = vector.broadcast %cst_27 : f32 to vector<8x128xf32>
    %120 = arith.addf %118, %119 : vector<8x128xf32>
    %121 = vector.extract_strided_slice %120 {offsets = [0, 0], sizes = [8, 32], strides = [1, 1]} : vector<8x128xf32> to vector<8x32xf32>
    %122 = vector.extract_strided_slice %120 {offsets = [0, 32], sizes = [8, 32], strides = [1, 1]} : vector<8x128xf32> to vector<8x32xf32>
    %123 = vector.extract_strided_slice %116 {offsets = [0, 64], sizes = [8, 32], strides = [1, 1]} : vector<8x128xf32> to vector<8x32xf32>
    %124 = vector.extract_strided_slice %120 {offsets = [0, 96], sizes = [8, 32], strides = [1, 1]} : vector<8x128xf32> to vector<8x32xf32>
    %125 = arith.mulf %122, %108 : vector<8x32xf32>
    %126 = arith.mulf %121, %123 : vector<8x32xf32>
    %127 = arith.addf %125, %126 : vector<8x32xf32>
    %128 = math.tanh %127 : vector<8x32xf32>
    %129 = arith.mulf %124, %128 : vector<8x32xf32>
    %130 = vector.extract_strided_slice %11 {offsets = [6, 0, 0], sizes = [1, 8, 128], strides = [1, 1, 1]} : vector<8x8x128xf32> to vector<1x8x128xf32>
    %131 = vector.shape_cast %130 : vector<1x8x128xf32> to vector<8x128xf32>
    %132 = arith.truncf %129 : vector<8x32xf32> to vector<8x32xbf16>
    %cst_28 = arith.constant dense<0.000000e+00> : vector<8x128xf32>
    %133 = tpu.matmul %132, %1, %cst_28 {dimension_numbers = #tpu.dot_dimension_numbers<[1], [0], [0], [1], [0, 0, 1, 1], [], []>} : vector<8x32xbf16>, vector<32x128xbf16>, vector<8x128xf32> -> vector<8x128xf32>
    %134 = arith.addf %131, %133 : vector<8x128xf32>
    %135 = math.tanh %134 : vector<8x128xf32>
    %cst_29 = arith.constant 5.000000e-01 : f32
    %136 = vector.broadcast %cst_29 : f32 to vector<8x128xf32>
    %137 = arith.mulf %136, %135 : vector<8x128xf32>
    %cst_30 = arith.constant 5.000000e-01 : f32
    %138 = vector.broadcast %cst_30 : f32 to vector<8x128xf32>
    %139 = arith.addf %137, %138 : vector<8x128xf32>
    %140 = vector.extract_strided_slice %139 {offsets = [0, 0], sizes = [8, 32], strides = [1, 1]} : vector<8x128xf32> to vector<8x32xf32>
    %141 = vector.extract_strided_slice %139 {offsets = [0, 32], sizes = [8, 32], strides = [1, 1]} : vector<8x128xf32> to vector<8x32xf32>
    %142 = vector.extract_strided_slice %135 {offsets = [0, 64], sizes = [8, 32], strides = [1, 1]} : vector<8x128xf32> to vector<8x32xf32>
    %143 = vector.extract_strided_slice %139 {offsets = [0, 96], sizes = [8, 32], strides = [1, 1]} : vector<8x128xf32> to vector<8x32xf32>
    %144 = arith.mulf %141, %127 : vector<8x32xf32>
    %145 = arith.mulf %140, %142 : vector<8x32xf32>
    %146 = arith.addf %144, %145 : vector<8x32xf32>
    %147 = math.tanh %146 : vector<8x32xf32>
    %148 = arith.mulf %143, %147 : vector<8x32xf32>
    %149 = vector.extract_strided_slice %11 {offsets = [7, 0, 0], sizes = [1, 8, 128], strides = [1, 1, 1]} : vector<8x8x128xf32> to vector<1x8x128xf32>
    %150 = vector.shape_cast %149 : vector<1x8x128xf32> to vector<8x128xf32>
    %151 = arith.truncf %148 : vector<8x32xf32> to vector<8x32xbf16>
    %cst_31 = arith.constant dense<0.000000e+00> : vector<8x128xf32>
    %152 = tpu.matmul %151, %1, %cst_31 {dimension_numbers = #tpu.dot_dimension_numbers<[1], [0], [0], [1], [0, 0, 1, 1], [], []>} : vector<8x32xbf16>, vector<32x128xbf16>, vector<8x128xf32> -> vector<8x128xf32>
    %153 = arith.addf %150, %152 : vector<8x128xf32>
    %154 = math.tanh %153 : vector<8x128xf32>
    %cst_32 = arith.constant 5.000000e-01 : f32
    %155 = vector.broadcast %cst_32 : f32 to vector<8x128xf32>
    %156 = arith.mulf %155, %154 : vector<8x128xf32>
    %cst_33 = arith.constant 5.000000e-01 : f32
    %157 = vector.broadcast %cst_33 : f32 to vector<8x128xf32>
    %158 = arith.addf %156, %157 : vector<8x128xf32>
    %159 = vector.extract_strided_slice %158 {offsets = [0, 0], sizes = [8, 32], strides = [1, 1]} : vector<8x128xf32> to vector<8x32xf32>
    %160 = vector.extract_strided_slice %158 {offsets = [0, 32], sizes = [8, 32], strides = [1, 1]} : vector<8x128xf32> to vector<8x32xf32>
    %161 = vector.extract_strided_slice %154 {offsets = [0, 64], sizes = [8, 32], strides = [1, 1]} : vector<8x128xf32> to vector<8x32xf32>
    %162 = vector.extract_strided_slice %158 {offsets = [0, 96], sizes = [8, 32], strides = [1, 1]} : vector<8x128xf32> to vector<8x32xf32>
    %163 = arith.mulf %160, %146 : vector<8x32xf32>
    %164 = arith.mulf %159, %161 : vector<8x32xf32>
    %165 = arith.addf %163, %164 : vector<8x32xf32>
    %166 = math.tanh %165 : vector<8x32xf32>
    %167 = arith.mulf %162, %166 : vector<8x32xf32>
    %c34 = arith.constant 34 : index
    %c0_34 = arith.constant 0 : index
    %168 = vector.load %arg2[%c34, %c0_34] : memref<40x128xf32, #tpu.memory_space<vmem>>, vector<1x32xf32>
    %c35 = arith.constant 35 : index
    %c0_35 = arith.constant 0 : index
    %169 = vector.load %arg2[%c35, %c0_35] : memref<40x128xf32, #tpu.memory_space<vmem>>, vector<1x1xf32>
    %170 = vector.broadcast %168 : vector<1x32xf32> to vector<8x32xf32>
    %171 = arith.mulf %167, %170 : vector<8x32xf32>
    %cst_36 = arith.constant dense<0.000000e+00> : vector<8xf32>
    %172 = vector.multi_reduction <add>, %171, %cst_36 [1] : vector<8x32xf32> to vector<8xf32>
    %173 = vector.shape_cast %172 : vector<8xf32> to vector<8x1xf32>
    %174 = vector.broadcast %169 : vector<1x1xf32> to vector<8x1xf32>
    %175 = arith.addf %173, %174 : vector<8x1xf32>
    %cst_37 = arith.constant 2.000000e+01 : f32
    %176 = vector.broadcast %cst_37 : f32 to vector<8x1xf32>
    %177 = arith.cmpf ogt, %175, %176 : vector<8x1xf32>
    %cst_38 = arith.constant 2.000000e+01 : f32
    %178 = vector.broadcast %cst_38 : f32 to vector<8x1xf32>
    %179 = arith.minimumf %175, %178 : vector<8x1xf32>
    %180 = math.exp %179 : vector<8x1xf32>
    %181 = math.log1p %180 : vector<8x1xf32>
    %182 = arith.select %177, %175, %181 : vector<8x1xi1>, vector<8x1xf32>
    %c0_39 = arith.constant 0 : index
    %c0_40 = arith.constant 0 : index
    %183 = vector.load %arg3[%c0_39, %c0_40] : memref<8x1xf32, #tpu.memory_space<vmem>>, vector<8x1xf32>
    tpu.vector_store %arg3[%c0_39, %c0_40], %182 {strides = array<i32>} : memref<8x1xf32, #tpu.memory_space<vmem>>, vector<8x1xf32>,
    return
  }
}

</mosaic_0001>

<bundles_post_ra>
// kernel: recurrent_model3_forward.1
= control target key start
LH: loop header
LB: loop body
LE: loop exit
PB: predicated region body
PF: predicated region fallthrough
CT: control target
= control target key end

     0   :  { %v832_v0 = vmov 0.0   ;;  %vm833_vm0 = vmmov 0   ;;  %v834_v6 = vmov 0   ;;  %s835_s26 = smov 32   ;;  %vm99_vm1 = vcmask 261120   ;;  %s836_s30 = smov 64   ;;  %s1029_s2 = inlined_call_operand.vmem [shape: f32[40,128], index: 2, kind: input, shape index: {}]   ;;  %s1030_s0 = inlined_call_operand.vmem [shape: f32[8,8,1], index: 0, kind: input, shape index: {}]   ;;  %s1031_s1 = inlined_call_operand.vmem [shape: f32[2,8,32], index: 1, kind: input, shape index: {}]   ;;  %s1032_s3 = inlined_call_operand.vmem [shape: f32[8,1], index: 3, kind: output, shape index: {}]  }
   0x1   :  { %724 = vmatprep.subr.bf16.mxu0 %v832_v0  ;;  %v15_v1 = vld [vmem:[%s1029_s2] sm:$0xff]  ;;  %v16_v2 = vld [vmem:[%s1029_s2 + $0x8] sm:$0xff]  ;;  %v17_v3 = vld [vmem:[%s1029_s2 + $0x10] sm:$0xff]  ;;  %728 = vmatprep.mubr.msk.bf16.mxu0 %vm833_vm0, %v832_v0  ;;  %s837_s19 = smov 96   ;;  %vm681_vm2 = vcmask 7168  }
   0x2   :  { %v870_v4 = vpack.c.bf16 %v16_v2, %v15_v1  ;;  %v18_v5 = vld [vmem:[%s1029_s2 + $0x18] sm:$0xff]  ;;  %794 = vset.pattern.permute.xlu0 %v834_v6  ;;  %v23_v7 = vld [vmem:[%s1030_s0] sm:$0xff]  ;;  %732 = vmatprep.subr.bf16.mxu1 %v832_v0  ;;  %v689_v8 = vld [vmem:[%s1031_s1 + $0x8] sm:$0xff] }
   0x3   :  { %33 = vperm.xlu0 %794, %v23_v7   ;;  %736 = vmatprep.mubr.msk.bf16.mxu1 %vm833_vm0, %v832_v0  ;;  %v885_v9 = vpack.c.bf16 %v18_v5, %v17_v3  ;;  %v95_v10 = vld [vmem:[%s1031_s1] sm:$0xff]  ;;  %v24_v32 = vld [vmem:[%s1030_s0 + $0x8] sm:$0xff]  ;;  %v25_v54 = vld [vmem:[%s1030_s0 + $0x10] sm:$0xff] }
   0x4   :  { %725 = vmatpush3.bf16.msra.mxu0 %v870_v4  ;;  %148 = vrot.lane.b32.xlu1 %v689_v8, %s835_s26  ;;  %v98_v11 = vpack.c.bf16 %v95_v10, %v95_v10  ;;  %v908_v12 = vld [vmem:[%s1029_s2 + $0x20] ss:$0 sm:$0xff]  ;;  %v914_v15 = vld [vmem:[%s1029_s2 + $0x21] ss:$0 sm:$0xff] }
   0x5   :  { %726 = vmatprep.subr.bf16.mxu0 %v832_v0  ;;  %733 = vmatpush3.bf16.msra.mxu1 %v870_v4 }
   0x6   :  { %734 = vmatprep.subr.bf16.mxu1 %v832_v0  ;;  %795 = vset.pattern.permute.xlu1 %v834_v6 }
   0x8   :  { %727 = vmatpush3.bf16.msra.mxu0 %v885_v9 }
   0x9   :  { %735 = vmatpush3.bf16.msra.mxu1 %v885_v9  ;;  %740 = vmatprep.subr.bf16.mxu0 %v832_v0 }
   0xa   :  { %748 = vmatprep.subr.bf16.mxu1 %v832_v0 }
   0xb   :  { %729 = vmatmul.mubr.msk.bf16.vlgmr.msra.gmra.mrb[0].mxu0 %vm99_vm1, %v98_v11 }
   0xc   :  { %741 = vmatpush3.bf16.msra.mxu0 %v870_v4  ;;  %744 = vmatprep.mubr.msk.bf16.mxu0 %vm833_vm0, %v832_v0 }
   0xd   :  { %742 = vmatprep.subr.bf16.mxu0 %v832_v0 }
  0x10   :  { %743 = vmatpush3.bf16.msra.mxu0 %v885_v9 }
  0x11   :  { %756 = vmatprep.subr.bf16.mxu0 %v832_v0 }
  0x76   :  { %v149_v27 = vpop.permute.xlu1 %148 }
  0x82   :  { %v34_v13 = vpop.permute.xlu0 %33 }
  0x83   :  { %v75_v14 = vmul.f32 %v908_v12, %v34_v13 }
  0x85   :  { %v87_v16 = vadd.f32 %v914_v15, %v75_v14 }
  0xde   :  { %v137_v17 = vpop.f32.mrb[0].mxu0 }
  0xdf   :  { %v143_v18 = vadd.f32 %v137_v17, %v87_v16  ;;  %v730_v19 = vpop.f32.mrb[1].mxu0  ;;  %v26_v17 = vld [vmem:[%s1030_s0 + $0x18] sm:$0xff] }
  0xe0   :  { %v140_v20 = vpop.f32.mrb[2].mxu0 }
  0xe1   :  { %796 = vtanh.f32 %v143_v18  ;;  %v731_v21 = vpop.f32.mrb[3].mxu0 }
  0xeb   :  { %v797_v22 = vpop.eup %796 }
  0xec   :  { %153 = vrot.lane.b32.xlu0 %v797_v22, %s836_s30  ;;  %v145_v23 = vmul.f32 0.5, %v797_v22 }
  0xee   :  { %v146_v24 = vadd.f32 0.5, %v145_v23 }
  0xf0   :  { %v151_v28 = vmul.f32 %v149_v27, %v146_v24 }
 0x15e   :  { %v154_v25 = vpop.permute.xlu0 %153 }
 0x15f   :  { %v156_v26 = vmul.f32 %v154_v25, %v146_v24 }
 0x161   :  { %158 = vrot.lane.b32.xlu1 %v156_v26, %s835_s26 }
 0x1d3   :  { %v159_v29 = vpop.permute.xlu1 %158 }
 0x1d4   :  { %v161_v30 = vadd.f32 %v159_v29, %v151_v28 }
 0x1d6   :  { %798 = vtanh.f32 %v161_v30 }
 0x1e0   :  { %v799_v31 = vpop.eup %798 }
 0x1e1   :  { %164 = vrot.lane.b32.xlu0 %v799_v31, %s836_s30 }
 0x1e5   :  { %38 = vperm.xlu0 %794, %v24_v32  }
 0x253   :  { %v165_v33 = vpop.permute.xlu0 %164 }
 0x254   :  { %v167_v34 = vmul.f32 %v165_v33, %v146_v24 }
 0x256   :  { %v168_v35 = vpack.c.bf16 %v167_v34, %v167_v34 }
 0x258   :  { %170 = vrot.lane.b32.xlu1 %v168_v35, %s835_s26 }
 0x264   :  { %v39_v37 = vpop.permute.xlu0 %38 }
 0x265   :  { %v76_v38 = vmul.f32 %v908_v12, %v39_v37 }
 0x267   :  { %v88_v39 = vadd.f32 %v914_v15, %v76_v38 }
 0x2ca   :  { %v171_v36 = vpop.permute.xlu1 %170 }
 0x2cb   :  { %737 = vmatmul.mubr.msk.bf16.vlgmr.msra.gmra.mrb[0].mxu1 %vm99_vm1, %v171_v36 }
 0x2cc   :  { %749 = vmatpush3.bf16.msra.mxu1 %v870_v4  ;;  %752 = vmatprep.mubr.msk.bf16.mxu1 %vm833_vm0, %v832_v0 }
 0x2cd   :  { %750 = vmatprep.subr.bf16.mxu1 %v832_v0 }
 0x2d0   :  { %751 = vmatpush3.bf16.msra.mxu1 %v885_v9 }
 0x2d1   :  { %764 = vmatprep.subr.bf16.mxu1 %v832_v0 }
 0x39e   :  { %v209_v40 = vpop.f32.mrb[0].mxu1 }
 0x39f   :  { %v215_v41 = vadd.f32 %v209_v40, %v88_v39  ;;  %v738_v42 = vpop.f32.mrb[1].mxu1  ;;  %v27_v39 = vld [vmem:[%s1030_s0 + $0x20] sm:$0xff] }
 0x3a0   :  { %v212_v43 = vpop.f32.mrb[2].mxu1 }
 0x3a1   :  { %800 = vtanh.f32 %v215_v41  ;;  %v739_v44 = vpop.f32.mrb[3].mxu1 }
 0x3ab   :  { %v801_v45 = vpop.eup %800 }
 0x3ac   :  { %221 = vrot.lane.b32.xlu1 %v801_v45, %s836_s30  ;;  %v217_v46 = vmul.f32 0.5, %v801_v45 }
 0x3ae   :  { %v218_v47 = vadd.f32 0.5, %v217_v46 }
 0x3b0   :  { %v219_v50 = vmul.f32 %v218_v47, %v161_v30 }
 0x41e   :  { %v222_v48 = vpop.permute.xlu1 %221 }
 0x41f   :  { %v224_v49 = vmul.f32 %v222_v48, %v218_v47 }
 0x421   :  { %226 = vrot.lane.b32.xlu0 %v224_v49, %s835_s26 }
 0x493   :  { %v227_v51 = vpop.permute.xlu0 %226 }
 0x494   :  { %v229_v52 = vadd.f32 %v227_v51, %v219_v50 }
 0x496   :  { %802 = vtanh.f32 %v229_v52 }
 0x4a0   :  { %v803_v53 = vpop.eup %802 }
 0x4a1   :  { %232 = vrot.lane.b32.xlu1 %v803_v53, %s836_s30 }
 0x4a5   :  { %43 = vperm.xlu1 %795, %v25_v54  }
 0x513   :  { %v233_v55 = vpop.permute.xlu1 %232 }
 0x514   :  { %v235_v56 = vmul.f32 %v233_v55, %v218_v47 }
 0x516   :  { %v236_v57 = vpack.c.bf16 %v235_v56, %v235_v56 }
 0x518   :  { %238 = vrot.lane.b32.xlu0 %v236_v57, %s835_s26 }
 0x524   :  { %v44_v59 = vpop.permute.xlu1 %43 }
 0x525   :  { %v77_v60 = vmul.f32 %v908_v12, %v44_v59 }
 0x527   :  { %v89_v61 = vadd.f32 %v914_v15, %v77_v60 }
 0x58a   :  { %v239_v58 = vpop.permute.xlu0 %238 }
 0x58b   :  { %745 = vmatmul.mubr.msk.bf16.vlgmr.msra.gmra.mrb[4].mxu0 %vm99_vm1, %v239_v58 }
 0x58c   :  { %757 = vmatpush3.bf16.msra.mxu0 %v870_v4  ;;  %760 = vmatprep.mubr.msk.bf16.mxu0 %vm833_vm0, %v832_v0 }
 0x58d   :  { %758 = vmatprep.subr.bf16.mxu0 %v832_v0 }
 0x590   :  { %759 = vmatpush3.bf16.msra.mxu0 %v885_v9 }
 0x591   :  { %772 = vmatprep.subr.bf16.mxu0 %v832_v0 }
 0x65e   :  { %v277_v62 = vpop.f32.mrb[4].mxu0 }
 0x65f   :  { %v283_v63 = vadd.f32 %v277_v62, %v89_v61  ;;  %v746_v1 = vpop.f32.mrb[5].mxu0  ;;  %v28_v61 = vld [vmem:[%s1030_s0 + $0x28] sm:$0xff] }
 0x660   :  { %v280_v2 = vpop.f32.mrb[6].mxu0 }
 0x661   :  { %804 = vtanh.f32 %v283_v63  ;;  %v747_v3 = vpop.f32.mrb[7].mxu0 }
 0x66b   :  { %v805_v5 = vpop.eup %804 }
 0x66c   :  { %289 = vrot.lane.b32.xlu0 %v805_v5, %s836_s30  ;;  %v285_v6 = vmul.f32 0.5, %v805_v5 }
 0x66e   :  { %v286_v7 = vadd.f32 0.5, %v285_v6 }
 0x670   :  { %v287_v11 = vmul.f32 %v286_v7, %v229_v52 }
 0x6de   :  { %v290_v8 = vpop.permute.xlu0 %289 }
 0x6df   :  { %v292_v10 = vmul.f32 %v290_v8, %v286_v7 }
 0x6e1   :  { %294 = vrot.lane.b32.xlu1 %v292_v10, %s835_s26 }
 0x753   :  { %v295_v13 = vpop.permute.xlu1 %294 }
 0x754   :  { %v297_v14 = vadd.f32 %v295_v13, %v287_v11 }
 0x756   :  { %806 = vtanh.f32 %v297_v14 }
 0x760   :  { %v807_v16 = vpop.eup %806 }
 0x761   :  { %300 = vrot.lane.b32.xlu0 %v807_v16, %s836_s30 }
 0x765   :  { %48 = vperm.xlu0 %794, %v26_v17  }
 0x7d3   :  { %v301_v18 = vpop.permute.xlu0 %300 }
 0x7d4   :  { %v303_v19 = vmul.f32 %v301_v18, %v286_v7 }
 0x7d6   :  { %v304_v20 = vpack.c.bf16 %v303_v19, %v303_v19 }
 0x7d8   :  { %306 = vrot.lane.b32.xlu1 %v304_v20, %s835_s26 }
 0x7e4   :  { %v49_v22 = vpop.permute.xlu0 %48 }
 0x7e5   :  { %v78_v23 = vmul.f32 %v908_v12, %v49_v22 }
 0x7e7   :  { %v90_v24 = vadd.f32 %v914_v15, %v78_v23 }
 0x84a   :  { %v307_v21 = vpop.permute.xlu1 %306 }
 0x84b   :  { %753 = vmatmul.mubr.msk.bf16.vlgmr.msra.gmra.mrb[4].mxu1 %vm99_vm1, %v307_v21  ;;  %v29_v21 = vld [vmem:[%s1030_s0 + $0x30] sm:$0xff] }
 0x84c   :  { %765 = vmatpush3.bf16.msra.mxu1 %v870_v4  ;;  %768 = vmatprep.mubr.msk.bf16.mxu1 %vm833_vm0, %v832_v0 }
 0x84d   :  { %766 = vmatprep.subr.bf16.mxu1 %v832_v0 }
 0x850   :  { %767 = vmatpush3.bf16.msra.mxu1 %v885_v9 }
 0x851   :  { %780 = vmatprep.subr.bf16.mxu1 %v832_v0 }
 0x91e   :  { %v345_v25 = vpop.f32.mrb[4].mxu1 }
 0x91f   :  { %v351_v26 = vadd.f32 %v345_v25, %v90_v24  ;;  %v754_v27 = vpop.f32.mrb[5].mxu1 }
 0x920   :  { %v348_v28 = vpop.f32.mrb[6].mxu1 }
 0x921   :  { %808 = vtanh.f32 %v351_v26  ;;  %v755_v29 = vpop.f32.mrb[7].mxu1 }
 0x92b   :  { %v809_v30 = vpop.eup %808 }
 0x92c   :  { %357 = vrot.lane.b32.xlu1 %v809_v30, %s836_s30  ;;  %v353_v31 = vmul.f32 0.5, %v809_v30 }
 0x92e   :  { %v354_v32 = vadd.f32 0.5, %v353_v31 }
 0x930   :  { %v355_v35 = vmul.f32 %v354_v32, %v297_v14 }
 0x99e   :  { %v358_v33 = vpop.permute.xlu1 %357 }
 0x99f   :  { %v360_v34 = vmul.f32 %v358_v33, %v354_v32 }
 0x9a1   :  { %362 = vrot.lane.b32.xlu0 %v360_v34, %s835_s26 }
 0xa13   :  { %v363_v36 = vpop.permute.xlu0 %362 }
 0xa14   :  { %v365_v37 = vadd.f32 %v363_v36, %v355_v35 }
 0xa16   :  { %810 = vtanh.f32 %v365_v37 }
 0xa20   :  { %v811_v38 = vpop.eup %810 }
 0xa21   :  { %368 = vrot.lane.b32.xlu1 %v811_v38, %s836_s30 }
 0xa25   :  { %53 = vperm.xlu1 %795, %v27_v39  }
 0xa93   :  { %v369_v40 = vpop.permute.xlu1 %368 }
 0xa94   :  { %v371_v41 = vmul.f32 %v369_v40, %v354_v32 }
 0xa96   :  { %v372_v42 = vpack.c.bf16 %v371_v41, %v371_v41 }
 0xa98   :  { %374 = vrot.lane.b32.xlu0 %v372_v42, %s835_s26 }
 0xaa4   :  { %v54_v44 = vpop.permute.xlu1 %53 }
 0xaa5   :  { %v79_v45 = vmul.f32 %v908_v12, %v54_v44 }
 0xaa7   :  { %v91_v46 = vadd.f32 %v914_v15, %v79_v45 }
 0xb0a   :  { %v375_v43 = vpop.permute.xlu0 %374 }
 0xb0b   :  { %761 = vmatmul.mubr.msk.bf16.vlgmr.msra.gmra.mrb[8].mxu0 %vm99_vm1, %v375_v43  ;;  %v30_v43 = vld [vmem:[%s1030_s0 + $0x38] sm:$0xff] }
 0xb0c   :  { %773 = vmatpush3.bf16.msra.mxu0 %v870_v4  ;;  %776 = vmatprep.mubr.msk.bf16.mxu0 %vm833_vm0, %v832_v0 }
 0xb0d   :  { %774 = vmatprep.subr.bf16.mxu0 %v832_v0 }
 0xb10   :  { %775 = vmatpush3.bf16.msra.mxu0 %v885_v9 }
 0xbde   :  { %v413_v47 = vpop.f32.mrb[8].mxu0 }
 0xbdf   :  { %v419_v48 = vadd.f32 %v413_v47, %v91_v46  ;;  %v762_v49 = vpop.f32.mrb[9].mxu0 }
 0xbe0   :  { %v416_v50 = vpop.f32.mrb[10].mxu0 }
 0xbe1   :  { %812 = vtanh.f32 %v419_v48  ;;  %v763_v51 = vpop.f32.mrb[11].mxu0 }
 0xbeb   :  { %v813_v52 = vpop.eup %812 }
 0xbec   :  { %425 = vrot.lane.b32.xlu0 %v813_v52, %s836_s30  ;;  %v421_v53 = vmul.f32 0.5, %v813_v52 }
 0xbee   :  { %v422_v54 = vadd.f32 0.5, %v421_v53 }
 0xbf0   :  { %v423_v57 = vmul.f32 %v422_v54, %v365_v37 }
 0xc5e   :  { %v426_v55 = vpop.permute.xlu0 %425 }
 0xc5f   :  { %v428_v56 = vmul.f32 %v426_v55, %v422_v54 }
 0xc61   :  { %430 = vrot.lane.b32.xlu1 %v428_v56, %s835_s26 }
 0xcd3   :  { %v431_v58 = vpop.permute.xlu1 %430 }
 0xcd4   :  { %v433_v59 = vadd.f32 %v431_v58, %v423_v57 }
 0xcd6   :  { %814 = vtanh.f32 %v433_v59 }
 0xce0   :  { %v815_v60 = vpop.eup %814 }
 0xce1   :  { %436 = vrot.lane.b32.xlu0 %v815_v60, %s836_s30 }
 0xce5   :  { %58 = vperm.xlu0 %794, %v28_v61  }
 0xd53   :  { %v437_v62 = vpop.permute.xlu0 %436 }
 0xd54   :  { %v439_v63 = vmul.f32 %v437_v62, %v422_v54 }
 0xd56   :  { %v440_v1 = vpack.c.bf16 %v439_v63, %v439_v63 }
 0xd58   :  { %442 = vrot.lane.b32.xlu1 %v440_v1, %s835_s26 }
 0xd64   :  { %v59_v3 = vpop.permute.xlu0 %58 }
 0xd65   :  { %v80_v5 = vmul.f32 %v908_v12, %v59_v3 }
 0xd67   :  { %v92_v6 = vadd.f32 %v914_v15, %v80_v5 }
 0xdca   :  { %v443_v2 = vpop.permute.xlu1 %442 }
 0xdcb   :  { %769 = vmatmul.mubr.msk.bf16.vlgmr.msra.gmra.mrb[8].mxu1 %vm99_vm1, %v443_v2 }
 0xdcc   :  { %781 = vmatpush3.bf16.msra.mxu1 %v870_v4  ;;  %784 = vmatprep.mubr.msk.bf16.mxu1 %vm833_vm0, %v832_v0 }
 0xdcd   :  { %782 = vmatprep.subr.bf16.mxu1 %v832_v0 }
 0xdd0   :  { %783 = vmatpush3.bf16.msra.mxu1 %v885_v9 }
 0xe9e   :  { %v481_v7 = vpop.f32.mrb[8].mxu1 }
 0xe9f   :  { %v487_v8 = vadd.f32 %v481_v7, %v92_v6  ;;  %v770_v10 = vpop.f32.mrb[9].mxu1 }
 0xea0   :  { %v484_v11 = vpop.f32.mrb[10].mxu1 }
 0xea1   :  { %816 = vtanh.f32 %v487_v8  ;;  %v771_v13 = vpop.f32.mrb[11].mxu1  ;;  %v699_v8 = vld [vmem:[%s1029_s2 + $0x23] ss:$0 sm:$0xff] }
 0xeab   :  { %v817_v14 = vpop.eup %816 }
 0xeac   :  { %493 = vrot.lane.b32.xlu1 %v817_v14, %s836_s30  ;;  %v489_v4 = vmul.f32 0.5, %v817_v14 }
 0xeae   :  { %v490_v16 = vadd.f32 0.5, %v489_v4 }
 0xeb0   :  { %v491_v9 = vmul.f32 %v490_v16, %v433_v59 }
 0xf1e   :  { %v494_v17 = vpop.permute.xlu1 %493 }
 0xf1f   :  { %v496_v0 = vmul.f32 %v494_v17, %v490_v16 }
 0xf21   :  { %498 = vrot.lane.b32.xlu0 %v496_v0, %s835_s26 }
 0xf93   :  { %v499_v18 = vpop.permute.xlu0 %498 }
 0xf94   :  { %v501_v19 = vadd.f32 %v499_v18, %v491_v9 }
 0xf96   :  { %818 = vtanh.f32 %v501_v19 }
 0xfa0   :  { %v819_v20 = vpop.eup %818 }
 0xfa1   :  { %504 = vrot.lane.b32.xlu1 %v819_v20, %s836_s30 }
 0xfa5   :  { %63 = vperm.xlu1 %795, %v29_v21  }
0x1013   :  { %v505_v22 = vpop.permute.xlu1 %504 }
0x1014   :  { %v507_v23 = vmul.f32 %v505_v22, %v490_v16 }
0x1016   :  { %v508_v24 = vpack.c.bf16 %v507_v23, %v507_v23 }
0x1018   :  { %510 = vrot.lane.b32.xlu0 %v508_v24, %s835_s26 }
0x1024   :  { %v64_v26 = vpop.permute.xlu1 %63 }
0x1025   :  { %v81_v27 = vmul.f32 %v908_v12, %v64_v26 }
0x1027   :  { %v93_v28 = vadd.f32 %v914_v15, %v81_v27 }
0x108a   :  { %v511_v25 = vpop.permute.xlu0 %510 }
0x108b   :  { %777 = vmatmul.mubr.msk.bf16.vlgmr.msra.gmra.mrb[12].mxu0 %vm99_vm1, %v511_v25 }
0x115e   :  { %v549_v29 = vpop.f32.mrb[12].mxu0 }
0x115f   :  { %v555_v30 = vadd.f32 %v549_v29, %v93_v28  ;;  %v778_v31 = vpop.f32.mrb[13].mxu0 }
0x1160   :  { %v552_v32 = vpop.f32.mrb[14].mxu0 }
0x1161   :  { %820 = vtanh.f32 %v555_v30  ;;  %v779_v33 = vpop.f32.mrb[15].mxu0 }
0x116b   :  { %v821_v34 = vpop.eup %820 }
0x116c   :  { %561 = vrot.lane.b32.xlu0 %v821_v34, %s836_s30  ;;  %v557_v35 = vmul.f32 0.5, %v821_v34 }
0x116e   :  { %v558_v36 = vadd.f32 0.5, %v557_v35 }
0x1170   :  { %v559_v39 = vmul.f32 %v558_v36, %v501_v19 }
0x11de   :  { %v562_v37 = vpop.permute.xlu0 %561 }
0x11df   :  { %v564_v38 = vmul.f32 %v562_v37, %v558_v36 }
0x11e1   :  { %566 = vrot.lane.b32.xlu1 %v564_v38, %s835_s26 }
0x1253   :  { %v567_v40 = vpop.permute.xlu1 %566 }
0x1254   :  { %v569_v41 = vadd.f32 %v567_v40, %v559_v39 }
0x1256   :  { %822 = vtanh.f32 %v569_v41 }
0x1260   :  { %v823_v42 = vpop.eup %822 }
0x1261   :  { %572 = vrot.lane.b32.xlu0 %v823_v42, %s836_s30 }
0x1265   :  { %68 = vperm.xlu0 %794, %v30_v43  }
0x12d3   :  { %v573_v44 = vpop.permute.xlu0 %572 }
0x12d4   :  { %v575_v45 = vmul.f32 %v573_v44, %v558_v36 }
0x12d6   :  { %v576_v46 = vpack.c.bf16 %v575_v45, %v575_v45 }
0x12d8   :  { %578 = vrot.lane.b32.xlu1 %v576_v46, %s835_s26 }
0x12e4   :  { %v69_v48 = vpop.permute.xlu0 %68 }
0x12e5   :  { %v82_v49 = vmul.f32 %v908_v12, %v69_v48  ;;  %v698_v12 = vld [vmem:[%s1029_s2 + $0x22] ss:$0 sm:$0xff] }
0x12e7   :  { %v94_v50 = vadd.f32 %v914_v15, %v82_v49 }
0x134a   :  { %v579_v47 = vpop.permute.xlu1 %578 }
0x134b   :  { %785 = vmatmul.mubr.msk.bf16.vlgmr.msra.gmra.mrb[12].mxu1 %vm99_vm1, %v579_v47 }
0x141e   :  { %v617_v51 = vpop.f32.mrb[12].mxu1 }
0x141f   :  { %v623_v52 = vadd.f32 %v617_v51, %v94_v50  ;;  %v786_v53 = vpop.f32.mrb[13].mxu1 }
0x1420   :  { %v620_v54 = vpop.f32.mrb[14].mxu1 }
0x1421   :  { %824 = vtanh.f32 %v623_v52  ;;  %v787_v55 = vpop.f32.mrb[15].mxu1 }
0x142b   :  { %v825_v56 = vpop.eup %824 }
0x142c   :  { %629 = vrot.lane.b32.xlu1 %v825_v56, %s836_s30  ;;  %v625_v57 = vmul.f32 0.5, %v825_v56 }
0x142e   :  { %v626_v58 = vadd.f32 0.5, %v625_v57 }
0x1430   :  { %v627_v15 = vmul.f32 %v626_v58, %v569_v41 }
0x149e   :  { %v630_v59 = vpop.permute.xlu1 %629 }
0x149f   :  { %v632_v60 = vmul.f32 %v630_v59, %v626_v58 }
0x14a1   :  { %634 = vrot.lane.b32.xlu0 %v632_v60, %s835_s26 }
0x14a5   :  { %651 = vrot.lane.b32.xlu0 %v698_v12, %s837_s19 }
0x1513   :  { %v635_v61 = vpop.permute.xlu0 %634 }
0x1514   :  { %v637_v62 = vadd.f32 %v635_v61, %v627_v15 }
0x1516   :  { %826 = vtanh.f32 %v637_v62 }
0x1517   :  { %v652_v2 = vpop.permute.xlu0 %651 }
0x1520   :  { %v827_v63 = vpop.eup %826 }
0x1521   :  { %640 = vrot.lane.b32.xlu1 %v827_v63, %s836_s30 }
0x1593   :  { %v641_v1 = vpop.permute.xlu1 %640 }
0x1594   :  { %v643_v3 = vmul.f32 %v641_v1, %v626_v58 }
0x1596   :  { %v654_v5 = vmul.f32 %v652_v2, %v643_v3 }
0x1598   :  { %656 = vrot.lane.b32.xlu1 %v654_v5, %s835_s26 }
0x160a   :  { %v657_v6 = vpop.permute.xlu1 %656 }
0x160b   :  { %v659_v7 = vsel %vm99_vm1, %v657_v6, 0.0 }
0x160c   :  { %660 = vadd.xlane.f32.xlu0 %v659_v7 }
0x1699   :  { %v661_v10 = vpop.xlane.xlu0 %660 }
0x169a   :  { %v666_v11 = vadd.f32 %v699_v8, %v661_v10 }
0x169c   :  { %v668_v13 = vmin.f32 %v666_v11, 20.0  ;;  %vm667_vm4 = vcmp.gt.f32.partialorder %v666_v11, 20.0 }
0x169e   :  { %v669_v14 = vmul.f32 1.442695, %v668_v13 }
0x16a0   :  { %828 = vpow2.f32 %v669_v14 }
0x16aa   :  { %v829_v4 = vpop.eup %828 }
0x16ab   :  { %v671_v16 = vadd.f32 1.0, %v829_v4  ;;  %v674_v17 = vmul.f32 -0.5, %v829_v4  ;;  %v677_v9 = vand.u32 2147483647, %v829_v4 }
0x16ad   :  { %830 = vlog2.f32 %v671_v16  ;;  %v675_v0 = vadd.f32 1.0, %v674_v17  ;;  %vm678_vm3 = vcmp.lt.f32.partialorder %v677_v9, 0.0004427343 }
0x16af   :  { %v676_v20 = vmul.f32 %v829_v4, %v675_v0 }
0x16b7   :  { %v831_v18 = vpop.eup %830 }
0x16b8   :  { %v673_v19 = vmul.f32 0.6931472, %v831_v18 }
0x16ba   :  { %v679_v21 = vsel %vm678_vm3, %v676_v20, %v673_v19 }
0x16bb   :  { %v680_v22 = vsel %vm667_vm4, %v666_v11, %v679_v21 }
0x16bc   :  { %682 = vst.msk [vmem:[%s1032_s3] sm:$0xff] %vm681_vm2, %v680_v22 }

</bundles_post_ra>
